<compile_context>
chip_gen: v7x
topology: tpu7x:2x2x1
jax: 0.10.0
libtpu: 0.0.40
codegen_flags: <defaults>
</compile_context>

<pallas_src>
import functools
import math

import jax
import jax.numpy as jnp
from jax import lax
from jax.experimental import pallas as pl
from jax.experimental.pallas import tpu as pltpu


def _round_up(n: int, m: int) -> int:
    return ((n + m - 1) // m) * m


# ---------------------------------------------------------------------------
# Pallas kernel: fused Linear -> ReLU -> Softmax(dim=1)
# ---------------------------------------------------------------------------
def block_policy_kernel(x_ref, wt_ref, b_ref, o_ref, *, out_dim: int):
    # x_ref : (TM, D)      f32 input rows for this grid step
    # wt_ref: (D, O_pad)   bf16 pre-transposed weight (padded columns are zero)
    # b_ref : (1, O_pad)   f32 bias (padded entries are zero)
    # o_ref : (TM, O_pad)  f32 lane-dense output tile
    logits = (
        jnp.dot(
            x_ref[...].astype(jnp.bfloat16),      # bf16 MXU inputs, f32 accumulate
            wt_ref[...],
            preferred_element_type=jnp.float32,
        )
        + b_ref[...]
    )
    act = jnp.maximum(logits, 0.0)                 # ReLU (f32)

    # Softmax over the last (lane) axis with padded columns masked out.
    # Padded columns have zero weights & bias -> logit 0 -> relu 0, which can
    # never exceed the per-row max of the real columns (relu >= 0), so the max
    # is unaffected; mask only numerator/denominator.
    col = lax.broadcasted_iota(jnp.int32, act.shape, dimension=1)
    valid = col < out_dim
    m = jnp.max(act, axis=1, keepdims=True)
    e = jnp.where(valid, jnp.exp(act - m), 0.0)
    denom = jnp.sum(e, axis=1, keepdims=True)
    # Exact division: rows sum to 1 to f32 precision (safe for Categorical /
    # log-prob consumers).  The single per-row divide is negligible here.
    o_ref[...] = e / denom


# ---------------------------------------------------------------------------
# Wrapper
# ---------------------------------------------------------------------------
@functools.partial(jax.jit, static_argnames=("out_dim",))
def block_policy_forward(x, wt_pad, b_pad, out_dim):
    """x: (N, D) float32.  wt_pad: (D, O_pad) bf16.  b_pad: (1, O_pad) f32."""
    N, D = x.shape
    D_w, O_pad = wt_pad.shape
    assert D_w == D, "weight input dim must match x feature dim (no D padding)"

    # Pad rows only to the sublane multiple (8); never materialize a D-padded x.
    N8 = _round_up(N, 8)
    if N8 != N:
        x = jnp.pad(x, ((0, N8 - N), (0, 0)))

    # Row tile: large tiles amortize the ~0.35us/step grid overhead, but for
    # larger N keep >= 2 programs so "parallel" can shard rows across both v7x
    # TensorCores.  VMEM cost stays tiny (~TM*(D+O_pad)*4*2 bytes).
    if N8 <= 256:
        TM = N8
    else:
        TM = min(1024, _round_up((N8 + 1) // 2, 8))
    grid = pl.cdiv(N8, TM)          # tail tile (if any) handled by Pallas

    bytes_accessed = (
        N8 * D * 4                              # x read (f32)
        + D * O_pad * 2                         # weight read (bf16)
        + O_pad * 4                             # bias read (f32)
        + N8 * O_pad * 4                        # output write (f32)
    )

    kernel = functools.partial(block_policy_kernel, out_dim=out_dim)

    out_pad = pl.pallas_call(
        kernel,
        out_shape=jax.ShapeDtypeStruct((N8, O_pad), jnp.float32),
        grid=(grid,),
        in_specs=[
            # Input rows: feature dim left at full extent D (no padding).
            pl.BlockSpec((TM, D), lambda i: (i, 0)),
            # Replicated weight/bias: constant index_map -> single buffer.
            pl.BlockSpec((D, O_pad), lambda i: (0, 0),
                         pipeline_mode=pl.Buffered(1)),
            pl.BlockSpec((1, O_pad), lambda i: (0, 0),
                         pipeline_mode=pl.Buffered(1)),
        ],
        out_specs=pl.BlockSpec((TM, O_pad), lambda i: (i, 0)),
        compiler_params=pltpu.CompilerParams(
            dimension_semantics=("parallel",),   # shard rows across TCs (v7x)
            # Note: raise vmem_limit_bytes here if input_dim/output_dim grow
            # large enough that the replicated weight approaches the scoped
            # VMEM default (esp. on v7x, 64 MiB physical).
        ),
        cost_estimate=pl.CostEstimate(
            flops=2 * N8 * D * O_pad,
            transcendentals=N8 * O_pad,
            bytes_accessed=bytes_accessed,
        ),
    )(x, wt_pad, b_pad)

    # Slice off padded rows/columns.  If the consumer can take the padded
    # lane-dense layout directly, skip this to save an HBM pass.
    return out_pad[:N, :out_dim]


# ---------------------------------------------------------------------------
# Pure-JAX reference (for validation only)
# ---------------------------------------------------------------------------
def block_policy_reference(x, W, b):
    a = jnp.maximum(x @ W.T + b, 0.0)
    return jax.nn.softmax(a, axis=1)


# ---------------------------------------------------------------------------
# Deterministic parameter construction (nn.Linear init), pre-packed for TPU.
# ---------------------------------------------------------------------------
def make_params(key, input_dim, output_dim):
    kw, kb = jax.random.split(key)
    scale = 1.0 / math.sqrt(input_dim)
    W = jax.random.uniform(kw, (output_dim, input_dim), jnp.float32, -scale, scale)
    b = jax.random.uniform(kb, (output_dim,), jnp.float32, -scale, scale)

    # Pre-transpose + zero-pad ONCE.  Only the output (lane) dim is padded to a
    # multiple of 128; the input dim stays un-padded so x needs no D padding.
    # Padded weight columns / bias entries MUST stay exactly zero (masking
    # invariant in the kernel).  Weight stored bf16 for the MXU.
    O_pad = _round_up(output_dim, 128)
    wt_pad = (
        jnp.zeros((input_dim, O_pad), jnp.float32)
        .at[:, :output_dim].set(W.T)
        .astype(jnp.bfloat16)
    )
    b_pad = jnp.zeros((1, O_pad), jnp.float32).at[0, :output_dim].set(b)

    return {"W": W, "b": b, "wt_pad": wt_pad, "b_pad": b_pad}


if __name__ == "__main__":
    # Small shapes consistent with the module.
    batch, input_dim, output_dim = 8, 32, 16

    key = jax.random.PRNGKey(0)
    kp, kx = jax.random.split(key)
    params = make_params(kp, input_dim, output_dim)
    x = jax.random.normal(kx, (batch, input_dim), jnp.float32)

    out = block_policy_forward(x, params["wt_pad"], params["b_pad"], output_dim)
    jax.block_until_ready(out)

    # Validate against the pure-JAX f32 reference.  Tolerance accounts for the
    # bf16 matmul inputs (f32 accumulate); everything after the matmul is f32.
    ref = block_policy_reference(x, params["W"], params["b"])
    assert out.shape == (batch, output_dim)
    assert jnp.allclose(out, ref, atol=1e-2, rtol=1e-2)
    # Exact division in the kernel -> rows sum to 1 to f32 precision.
    assert jnp.allclose(jnp.sum(out, axis=1), 1.0, atol=1e-4)
    assert bool(jnp.all(out >= 0.0))

    print("KERNEL_OK")
</pallas_src>

<mosaic_0001>
module attributes {stable_mosaic.version = 11 : i64} {
  func.func @block_policy_kernel(%arg0: i32, %arg1: memref<8x32xf32, #tpu.memory_space<vmem>>, %arg2: memref<32x128xbf16, #tpu.memory_space<vmem>>, %arg3: memref<1x128xf32, #tpu.memory_space<vmem>>, %arg4: memref<8x128xf32, #tpu.memory_space<vmem>>) attributes {dimension_semantics = [#tpu.dimension_semantics<parallel>], iteration_bounds = array<i64: 1>, scalar_prefetch = 0 : i64, scratch_operands = 0 : i64, tpu.core_type = #tpu.core_type<tc>, window_params = [{transform_indices = @transform_0, window_bounds = array<i64: 8, 32>}, {pipeline_mode = #tpu.pipeline_mode<synchronous>, transform_indices = @transform_1, window_bounds = array<i64: 32, 128>}, {pipeline_mode = #tpu.pipeline_mode<synchronous>, transform_indices = @transform_2, window_bounds = array<i64: 1, 128>}, {transform_indices = @transform_3, window_bounds = array<i64: 8, 128>}]} {
    %c0 = arith.constant 0 : index
    %c0_0 = arith.constant 0 : index
    %0 = vector.load %arg1[%c0, %c0_0] : memref<8x32xf32, #tpu.memory_space<vmem>>, vector<8x32xf32>
    %1 = arith.truncf %0 : vector<8x32xf32> to vector<8x32xbf16>
    %c0_1 = arith.constant 0 : index
    %c0_2 = arith.constant 0 : index
    %2 = vector.load %arg2[%c0_1, %c0_2] : memref<32x128xbf16, #tpu.memory_space<vmem>>, vector<32x128xbf16>
    %cst = arith.constant dense<0.000000e+00> : vector<8x128xf32>
    %3 = tpu.matmul %1, %2, %cst {dimension_numbers = #tpu.dot_dimension_numbers<[1], [0], [0], [1], [0, 0, 1, 1], [], []>} : vector<8x32xbf16>, vector<32x128xbf16>, vector<8x128xf32> -> vector<8x128xf32>
    %c0_3 = arith.constant 0 : index
    %c0_4 = arith.constant 0 : index
    %4 = vector.load %arg3[%c0_3, %c0_4] : memref<1x128xf32, #tpu.memory_space<vmem>>, vector<1x128xf32>
    %5 = vector.broadcast %4 : vector<1x128xf32> to vector<8x128xf32>
    %6 = arith.addf %3, %5 : vector<8x128xf32>
    %cst_5 = arith.constant 0.000000e+00 : f32
    %7 = vector.broadcast %cst_5 : f32 to vector<8x128xf32>
    %8 = arith.maximumf %6, %7 : vector<8x128xf32>
    %9 = tpu.iota {dimensions = array<i32: 1>} : vector<8x128xi32>
    %c16_i32 = arith.constant 16 : i32
    %10 = vector.broadcast %c16_i32 : i32 to vector<8x128xi32>
    %11 = arith.cmpi slt, %9, %10 : vector<8x128xi32>
    %cst_6 = arith.constant dense<0xFF800000> : vector<8xf32>
    %12 = vector.multi_reduction <maximumf>, %8, %cst_6 [1] : vector<8x128xf32> to vector<8xf32>
    %13 = vector.shape_cast %12 : vector<8xf32> to vector<8x1xf32>
    %14 = vector.broadcast %13 : vector<8x1xf32> to vector<8x128xf32>
    %15 = arith.subf %8, %14 : vector<8x128xf32>
    %16 = math.exp %15 : vector<8x128xf32>
    %cst_7 = arith.constant 0.000000e+00 : f32
    %17 = vector.broadcast %cst_7 : f32 to vector<8x128xf32>
    %18 = arith.select %11, %16, %17 : vector<8x128xi1>, vector<8x128xf32>
    %cst_8 = arith.constant dense<0.000000e+00> : vector<8xf32>
    %19 = vector.multi_reduction <add>, %18, %cst_8 [1] : vector<8x128xf32> to vector<8xf32>
    %20 = vector.shape_cast %19 : vector<8xf32> to vector<8x1xf32>
    %21 = vector.broadcast %20 : vector<8x1xf32> to vector<8x128xf32>
    %22 = arith.divf %18, %21 : vector<8x128xf32>
    %c0_9 = arith.constant 0 : index
    %c0_10 = arith.constant 0 : index
    %23 = vector.load %arg4[%c0_9, %c0_10] : memref<8x128xf32, #tpu.memory_space<vmem>>, vector<8x128xf32>
    tpu.vector_store %arg4[%c0_9, %c0_10], %22 {strides = array<i32>} : memref<8x128xf32, #tpu.memory_space<vmem>>, vector<8x128xf32>,
    return
  }
  func.func @transform_0(%arg0: i32) -> (i32, i32) {
    %c0_i32 = arith.constant 0 : i32
    %c0_i32_0 = arith.constant 0 : i32
    return %arg0, %c0_i32 : i32, i32
  }
  func.func @transform_1(%arg0: i32) -> (i32, i32) {
    %c0_i32 = arith.constant 0 : i32
    %c0_i32_0 = arith.constant 0 : i32
    %c0_i32_1 = arith.constant 0 : i32
    return %c0_i32, %c0_i32_0 : i32, i32
  }
  func.func @transform_2(%arg0: i32) -> (i32, i32) {
    %c0_i32 = arith.constant 0 : i32
    %c0_i32_0 = arith.constant 0 : i32
    %c0_i32_1 = arith.constant 0 : i32
    return %c0_i32, %c0_i32_0 : i32, i32
  }
  func.func @transform_3(%arg0: i32) -> (i32, i32) {
    %c0_i32 = arith.constant 0 : i32
    %c0_i32_0 = arith.constant 0 : i32
    return %arg0, %c0_i32 : i32, i32
  }
}

</mosaic_0001>

<bundles_post_ra>
// kernel: block_policy_forward.1
= control target key start
LH: loop header
LB: loop body
LE: loop exit
PB: predicated region body
PF: predicated region fallthrough
CT: control target
= control target key end

     0   :  { %8 = vsyncpa [#allocation3], 0  ;;  %s315_s0 = inlined_call_operand.hbm [shape: f32[8,32], index: 0, kind: input, shape index: {}]   ;;  %s316_s1 = inlined_call_operand.hbm [shape: bf16[32,128], index: 1, kind: input, shape index: {}]   ;;  %s317_s2 = inlined_call_operand.vmem [shape: f32[1,128], index: 2, kind: input, shape index: {}]   ;;  %s318_s3 = inlined_call_operand.hbm [shape: f32[8,128], index: 3, kind: output, shape index: {}]  }
   0x1   :  { %9 = vsyncpa [#allocation6], 0 }
   0x2   :  { %10 = vsyncpa [#allocation4], 0  ;;  %s242_s12 = smov [#allocation2]   ;;  %s243_s14 = smov [#allocation5]  }
   0x3   :  { %s17_s13 = sshll.u32 %s242_s12, 4  ;;  %s26_s15 = sshll.u32 %s243_s14, 4  ;;  %s18_s13 = int_to_ptr.vmem [resolvable:$true] %s17_s13  ;;  %s269_s15 = int_to_ptr.vmem [resolvable:$true] %s26_s15 }
   0x4   :  { %s170_s18 = scalar_lea.hbm %s315_s0, 128 }
   0x5   :  { %p171_p0 = scmp.ne.s32.totalorder %s315_s0, %s170_s18  ;;  %p174_p1 = scmp.lt.u32.totalorder %s170_s18, %s315_s0 }
   0x7   :  { %p176_p2 = pnand %p174_p1, %p171_p0 }
   0x9   :  { %179 = shalt.err (!%p176_p2)
}
   0xa   :  { %s180_s23 = scalar_lea.vmem %s18_s13, 128  ;;  %p185_p4 = scmp.lt.s32.totalorder %s18_s13, %s18_s13 }
   0xb   :  { %p181_p3 = scmp.ne.s32.totalorder %s18_s13, %s180_s23  ;;  %p186_p5 = scmp.lt.s32.totalorder %s180_s23, %s180_s23 }
   0xd   :  { %p187_p6 = por %p186_p5, %p185_p4 }
   0xf   :  { %p188_p7 = pnand %p187_p6, %p181_p3 }
  0x11   :  { %191 = shalt.err (!%p188_p7)
}
  0x12   :  { %20 = dma.hbm_to_vmem [thread:$0]  %s315_s0, 128, %s18_s13, [#allocation3]  }
  0x13   :  { %s192_s28 = scalar_lea.hbm %s316_s1, 256 }
  0x14   :  { %p193_p8 = scmp.ne.s32.totalorder %s316_s1, %s192_s28  ;;  %p196_p9 = scmp.lt.u32.totalorder %s192_s28, %s316_s1 }
  0x16   :  { %p198_p10 = pnand %p196_p9, %p193_p8 }
  0x18   :  { %201 = shalt.err (!%p198_p10)
}
  0x19   :  { %s202_s6 = scalar_lea.vmem %s269_s15, 256  ;;  %p207_p12 = scmp.lt.s32.totalorder %s269_s15, %s269_s15 }
  0x1a   :  { %p203_p11 = scmp.ne.s32.totalorder %s269_s15, %s202_s6  ;;  %p208_p13 = scmp.lt.s32.totalorder %s202_s6, %s202_s6 }
  0x1c   :  { %p209_p0 = por %p208_p13, %p207_p12 }
  0x1e   :  { %p210_p1 = pnand %p209_p0, %p203_p11 }
  0x20   :  { %213 = shalt.err (!%p210_p1)
}
  0x21   :  { %s244_s0 = smov 64   ;;  %s245_s7 = smov 4  }
  0x22   :  { %32 = dma.hbm_to_vmem [thread:$0]  %s316_s1, 256, %s269_s15, [#allocation6], %s244_s0, %s244_s0, %s245_s7  }
  0x23   :  { %236 = dma.done.wait [#allocation3], 128  }
  0x24   :  { %237 = vsyncadd [#allocation3], 4294967168 }
  0x25   :  { %238 = dma.done.wait [#allocation6], 256  }
  0x26   :  { %239 = vsyncadd [#allocation6], 4294967040  ;;  %v246_v0 = vmov 0.0   ;;  %vm247_vm0 = vmmov 0   ;;  %v164_v1 = vld [vmem:[#allocation5] sm:$0xff]   ;;  %v165_v2 = vld [vmem:[#allocation5 + $0x8] sm:$0xff]   ;;  %v112_v15 = vlaneseq }
  0x27   :  { %149 = vmatprep.subr.bf16.mxu0 %v246_v0  ;;  %153 = vmatprep.mubr.msk.bf16.mxu0 %vm247_vm0, %v246_v0  ;;  %v42_v3 = vld [vmem:[#allocation2] sm:$0xff]  ;;  %vm67_vm1 = vcmask 261120   ;;  %s248_s1 = smov [#allocation7]  }
  0x28   :  { %150 = vmatpush3.bf16.msra.mxu0 %v164_v1  ;;  %v43_v4 = vpack.c.bf16 %v42_v3, %v42_v3  ;;  %v142_v5 = vld [vmem:[%s317_s2] ss:$0 sm:$0xff]  ;;  %v113_v16 = vand.u32 127, %v112_v15  ;;  %s132_s2 = sshll.u32 %s248_s1, 4  ;;  %s133_s2 = int_to_ptr.vmem [resolvable:$true] %s132_s2 }
  0x29   :  { %151 = vmatprep.subr.bf16.mxu0 %v246_v0  ;;  %s214_s12 = scalar_lea.vmem %s133_s2, 128  ;;  %p219_p3 = scmp.lt.s32.totalorder %s133_s2, %s133_s2 }
  0x2a   :  { %vm114_vm2 = vcmp.lt.s32.totalorder %v113_v16, 16  ;;  %p215_p2 = scmp.ne.s32.totalorder %s133_s2, %s214_s12  ;;  %p220_p4 = scmp.lt.s32.totalorder %s214_s12, %s214_s12 }
  0x2c   :  { %152 = vmatpush3.bf16.msra.mxu0 %v165_v2  ;;  %p221_p5 = por %p220_p4, %p219_p3 }
  0x2e   :  { %p222_p6 = pnand %p221_p5, %p215_p2 }
  0x2f   :  { %154 = vmatmul.mubr.msk.bf16.vlgmr.msra.gmra.mrb[0].mxu0 %vm67_vm1, %v43_v4 }
 0x102   :  { %v105_v6 = vpop.f32.mrb[0].mxu0 }
 0x103   :  { %v106_v7 = vadd.f32 %v142_v5, %v105_v6  ;;  %v155_v8 = vpop.f32.mrb[1].mxu0 }
 0x104   :  { %v108_v9 = vpop.f32.mrb[2].mxu0 }
 0x105   :  { %v111_v10 = vmax.f32 %v106_v7, 0.0  ;;  %v156_v11 = vpop.f32.mrb[3].mxu0 }
 0x107   :  { %115 = vmax.xlane.f32.xlu0 %v111_v10 }
 0x194   :  { %v116_v12 = vpop.xlane.xlu0 %115 }
 0x195   :  { %v117_v13 = vsub.f32 %v111_v10, %v116_v12 }
 0x197   :  { %v118_v14 = vmul.f32 1.442695, %v117_v13 }
 0x199   :  { %166 = vpow2.f32 %v118_v14 }
 0x1a3   :  { %v167_v17 = vpop.eup %166 }
 0x1a4   :  { %v120_v18 = vsel %vm114_vm2, %v167_v17, 0.0 }
 0x1a5   :  { %121 = vadd.xlane.f32.xlu0 %v120_v18 }
 0x232   :  { %v122_v19 = vpop.xlane.xlu0 %121 }
 0x233   :  { %168 = vrcp.f32 %v122_v19 }
 0x23d   :  { %v169_v20 = vpop.eup %168 }
 0x23e   :  { %v124_v21 = vmul.f32 %v169_v20, %v120_v18 }
 0x240   :  { %125 = vst [vmem:[#allocation7] sm:$0xff] %v124_v21 }
 0x241   :  { %225 = shalt.err (!%p222_p6)
}
 0x242   :  { %s226_s15 = scalar_lea.hbm %s318_s3, 128 }
 0x243   :  { %p227_p7 = scmp.ne.s32.totalorder %s318_s3, %s226_s15  ;;  %p230_p8 = scmp.lt.u32.totalorder %s226_s15, %s318_s3 }
 0x245   :  { %p232_p9 = pnand %p230_p8, %p227_p7 }
 0x247   :  { %235 = shalt.err (!%p232_p9)
}
 0x248   :  { %135 = dma.vmem_to_hbm [thread:$0]  %s133_s2, 128, %s318_s3, [#allocation4]  }
 0x249   :  { %240 = dma.done.wait [#allocation4], 128  }
 0x24a   :  { %241 = vsyncadd [#allocation4], 4294967168 }
 0x24b   :  { %139 = vsyncpa [#allocation3], 1 }
 0x24c   :  { %140 = vsyncpa [#allocation6], 1 }
 0x24d   :  { %141 = vsyncpa [#allocation4], 1 }

</bundles_post_ra>
